<compile_context>
chip_gen: v7x
topology: tpu7x:2x2x1
jax: 0.10.0
libtpu: 0.0.40
codegen_flags: <defaults>
</compile_context>

<pallas_src>
import functools
import math

import jax
import jax.numpy as jnp
from jax.experimental import pallas as pl
from jax.experimental.pallas import tpu as pltpu


# ----------------------------------------------------------------------------
# Tiling helpers
# ----------------------------------------------------------------------------
def _row_tile(M, target):
    """Row (second-minor) tile: full M if small, else `target` (mult. of 8)."""
    return M if M <= target else target


def _feature_tile(dim, target):
    """Lane-dim tile: full dim if small; else the largest multiple-of-128
    power-of-two divisor of dim <= target; else fall back to full dim."""
    if dim <= target:
        return dim
    t = target
    while t >= 128:
        if dim % t == 0:
            return t
        t //= 2
    return dim  # non-divisible feature dim: take the whole axis (always legal)


def _pad_rows(x2, tm):
    """Pad rows up to a multiple of tm (padded rows are sliced off after)."""
    M = x2.shape[0]
    Mp = ((M + tm - 1) // tm) * tm
    if Mp != M:
        x2 = jnp.pad(x2, ((0, Mp - M), (0, 0)))
    return x2, M


def _choose_fused_tiles(M, K, N, x_itemsize, budget_bytes=12 << 20):
    """(tm, tn) for the fused LN+GEMM kernel, or (None, None) if it cannot fit
    the double-buffered VMEM budget (caller falls back to the split-K path)."""
    tn = _feature_tile(N, 512)
    for tm_target in (256, 128, 64, 32):
        tm = _row_tile(M, tm_target)
        res_bytes = 0 if tn == N else tm * tn * x_itemsize  # shared x tile if tn==N
        est = (2 * (tm * K * x_itemsize      # x tile
                    + K * tn * 2             # bf16 weight tile
                    + res_bytes              # residual tile (only if tn < N)
                    + tm * tn * 4)           # output tile
               + 2 * 2 * K * 4 + 2 * tn * 4)  # gamma/beta/bias
        if est <= budget_bytes:
            return tm, tn
        if tm >= M:
            break
    return None, None


# ----------------------------------------------------------------------------
# Kernel 1: standalone LayerNorm (module semantics), row-tiled, lane-dense.
#   x: [tm, D]   gamma/beta: [1, D]   out: [tm, D] (optionally bf16)
# ----------------------------------------------------------------------------
def _layernorm_kernel(x_ref, g_ref, b_ref, o_ref, *, eps, inv_dm1, approx):
    x = x_ref[...].astype(jnp.float32)
    mean = jnp.mean(x, axis=-1, keepdims=True)
    xc = x - mean
    var = jnp.sum(xc * xc, axis=-1, keepdims=True) * inv_dm1   # unbiased (D-1)
    inv = pl.reciprocal(jnp.sqrt(var) + eps, approx=approx)    # EUP, not a divide
    y = g_ref[...] * (xc * inv) + b_ref[...]
    o_ref[...] = y.astype(o_ref.dtype)


def layernorm(x2d, gamma, beta, *, eps=1e-6, out_dtype=None, row_tile=512,
              approx=False):
    M, D = x2d.shape
    out_dtype = out_dtype or x2d.dtype
    tm = _row_tile(M, row_tile)
    xp, M0 = _pad_rows(x2d, tm)
    Mp = xp.shape[0]
    g2 = gamma.reshape(1, D).astype(jnp.float32)
    b2 = beta.reshape(1, D).astype(jnp.float32)
    kern = functools.partial(_layernorm_kernel, eps=eps,
                             inv_dm1=1.0 / max(D - 1, 1), approx=approx)
    out = pl.pallas_call(
        kern,
        out_shape=jax.ShapeDtypeStruct((Mp, D), out_dtype),
        grid=(Mp // tm,),
        in_specs=[
            pl.BlockSpec((tm, D), lambda i: (i, 0)),
            pl.BlockSpec((1, D), lambda i: (0, 0)),
            pl.BlockSpec((1, D), lambda i: (0, 0)),
        ],
        out_specs=pl.BlockSpec((tm, D), lambda i: (i, 0)),
        compiler_params=pltpu.CompilerParams(
            dimension_semantics=("parallel",)),
    )(xp, g2, b2)
    return out[:M0] if Mp != M0 else out


# ----------------------------------------------------------------------------
# Kernel 2: fully fused LN -> Linear -> (+bias, +residual) for Linear(size,size).
#   Loads raw x tile (tm, K) once, normalizes in-kernel, GEMMs in bf16 on the
#   MXU, and folds bias + residual into the same store. When the output tile
#   spans the full width (tn == N == K), the x tile itself is the residual —
#   no second HBM stream and no intermediate y array anywhere.
# ----------------------------------------------------------------------------
def _fused_ln_linear_kernel(*refs, eps, inv_dm1, shared_residual):
    if shared_residual:
        x_ref, g_ref, bln_ref, w_ref, b_ref, o_ref = refs
    else:
        x_ref, g_ref, bln_ref, w_ref, b_ref, r_ref, o_ref = refs

    x = x_ref[...].astype(jnp.float32)
    mean = jnp.mean(x, axis=-1, keepdims=True)
    xc = x - mean
    var = jnp.sum(xc * xc, axis=-1, keepdims=True) * inv_dm1   # unbiased (D-1)
    inv = pl.reciprocal(jnp.sqrt(var) + eps, approx=True)      # EUP slot ~ free
    y = (g_ref[...] * (xc * inv) + bln_ref[...]).astype(jnp.bfloat16)

    acc = jnp.dot(y, w_ref[...], preferred_element_type=jnp.float32)

    res = x if shared_residual else r_ref[...].astype(jnp.float32)
    o_ref[...] = (res + acc + b_ref[...].astype(jnp.float32)).astype(o_ref.dtype)


def fused_ln_linear_residual(x2d, gamma, beta, w_t, bias, *, eps, tm, tn):
    M, K = x2d.shape
    Kw, N = w_t.shape
    assert K == Kw and K == N, "fused path requires a square Linear(size, size)"
    xp, M0 = _pad_rows(x2d, tm)
    Mp = xp.shape[0]
    g2 = gamma.reshape(1, K).astype(jnp.float32)
    bln2 = beta.reshape(1, K).astype(jnp.float32)
    b2 = bias.reshape(1, N).astype(jnp.float32)

    shared = (tn == N)
    kern = functools.partial(_fused_ln_linear_kernel, eps=eps,
                             inv_dm1=1.0 / max(K - 1, 1),
                             shared_residual=shared)

    in_specs = [
        pl.BlockSpec((tm, K), lambda i, j: (i, 0)),   # raw x tile (LN + residual)
        pl.BlockSpec((1, K), lambda i, j: (0, 0)),    # gamma
        pl.BlockSpec((1, K), lambda i, j: (0, 0)),    # beta
        pl.BlockSpec((K, tn), lambda i, j: (0, j)),   # weight column tile
        pl.BlockSpec((1, tn), lambda i, j: (0, j)),   # bias column tile
    ]
    args = [xp, g2, bln2, w_t, b2]
    if not shared:
        # Separate residual tile when the output is column-tiled (tn < N).
        in_specs.append(pl.BlockSpec((tm, tn), lambda i, j: (i, j)))
        args.append(xp)

    out = pl.pallas_call(
        kern,
        out_shape=jax.ShapeDtypeStruct((Mp, N), x2d.dtype),
        grid=(Mp // tm, N // tn),
        in_specs=in_specs,
        out_specs=pl.BlockSpec((tm, tn), lambda i, j: (i, j)),
        compiler_params=pltpu.CompilerParams(
            dimension_semantics=("parallel", "parallel")),
    )(*args)
    return out[:M0] if Mp != M0 else out


# ----------------------------------------------------------------------------
# Kernel 3 (fallback): split-K tiled Linear with residual/bias fused into the
# resident f32 output block (no accumulator scratch, no epilogue copy).
#   out = residual + (y @ w_t + bias)
# ----------------------------------------------------------------------------
def _linear_residual_kernel(y_ref, w_ref, b_ref, r_ref, o_ref):
    k = pl.program_id(2)

    @pl.when(k == 0)
    def _():
        o_ref[...] = (r_ref[...].astype(jnp.float32)
                      + b_ref[...].astype(jnp.float32)).astype(o_ref.dtype)

    o_ref[...] += jnp.dot(y_ref[...], w_ref[...],
                          preferred_element_type=jnp.float32).astype(o_ref.dtype)


def linear_residual(y, w_t, bias, residual, *, tm=256, tn=512, tk=512):
    M, K = y.shape
    Kw, N = w_t.shape
    assert K == Kw and residual.shape == (M, N)
    tm = _row_tile(M, tm)
    tn = _feature_tile(N, tn)
    tk = _feature_tile(K, tk)
    yp, M0 = _pad_rows(y, tm)
    rp, _ = _pad_rows(residual, tm)
    Mp = yp.shape[0]
    b2 = bias.reshape(1, N).astype(jnp.float32)
    out = pl.pallas_call(
        _linear_residual_kernel,
        out_shape=jax.ShapeDtypeStruct((Mp, N), jnp.float32),
        grid=(Mp // tm, N // tn, K // tk),
        in_specs=[
            pl.BlockSpec((tm, tk), lambda i, j, k: (i, k)),
            pl.BlockSpec((tk, tn), lambda i, j, k: (k, j)),
            pl.BlockSpec((1, tn), lambda i, j, k: (0, j)),
            pl.BlockSpec((tm, tn), lambda i, j, k: (i, j)),
        ],
        out_specs=pl.BlockSpec((tm, tn), lambda i, j, k: (i, j)),
        compiler_params=pltpu.CompilerParams(
            dimension_semantics=("parallel", "parallel", "arbitrary")),
    )(yp, w_t, b2, rp)
    out = out[:M0] if Mp != M0 else out
    return out.astype(residual.dtype)


# ----------------------------------------------------------------------------
# Module forward
# ----------------------------------------------------------------------------
def residual_skip_connection_with_layer_norm(x, gamma, beta, sublayer,
                                             *, eps=1e-6):
    """Generic path: x + dropout(sublayer(LayerNorm(x))) for any JAX sublayer.

    Dropout is identity (inference). The residual add is plain JAX so XLA can
    fuse it into the sublayer's epilogue (no dedicated add kernel).
    TODO(synk): training-mode dropout on the sublayer output not implemented.
    """
    B, S, D = x.shape
    x2 = x.reshape(B * S, D)
    y = layernorm(x2, gamma, beta, eps=eps)
    s = sublayer(y)
    return (x2 + s).reshape(B, S, D)


def residual_skip_connection_fused_linear(x, gamma, beta, w_t_bf16, bias,
                                          *, eps=1e-6):
    """Fast path when the sublayer is Linear(size, size).

    LN + GEMM + bias + residual in one kernel when the tile fits VMEM
    (intermediate y never goes to HBM); otherwise LN emits bf16 and a split-K
    pipeline folds residual + bias into its resident output block.
    """
    B, S, D = x.shape
    K, N = w_t_bf16.shape
    x2 = x.reshape(B * S, D)
    M = B * S
    if K == N == D:
        tm, tn = _choose_fused_tiles(M, K, N, jnp.dtype(x.dtype).itemsize)
        if tm is not None:
            return fused_ln_linear_residual(
                x2, gamma, beta, w_t_bf16, bias, eps=eps, tm=tm, tn=tn
            ).reshape(B, S, D)
    # Fallback: standalone LN (bf16 straight to the MXU) + split-K GEMM.
    y = layernorm(x2, gamma, beta, eps=eps, out_dtype=jnp.bfloat16, approx=True)
    return linear_residual(y, w_t_bf16, bias, x2).reshape(B, S, D)


if __name__ == "__main__":
    B, S, D = 2, 8, 32
    eps = 1e-6

    key = jax.random.PRNGKey(0)
    kx, kw, kb = jax.random.split(key, 3)

    x = jax.random.normal(kx, (B, S, D), jnp.float32)
    gamma = jnp.ones((D,), jnp.float32)   # a_2 init
    beta = jnp.zeros((D,), jnp.float32)   # b_2 init

    # Demo Linear sublayer (PyTorch nn.Linear init); weight transposed ONCE.
    bound = 1.0 / math.sqrt(D)
    w = jax.random.uniform(kw, (D, D), jnp.float32, -bound, bound)   # (out,in)
    bias = jax.random.uniform(kb, (D,), jnp.float32, -bound, bound)
    w_t_bf16 = jnp.transpose(w).astype(jnp.bfloat16)                 # (in,out)

    x2 = x.reshape(B * S, D)

    # Fused path (Linear sublayer): single kernel LN+GEMM+bias+residual.
    out_fused = residual_skip_connection_fused_linear(
        x, gamma, beta, w_t_bf16, bias, eps=eps)
    out_fused = jax.block_until_ready(out_fused)

    # Fallback pieces exercised explicitly (standalone LN + split-K GEMM).
    y_bf16 = layernorm(x2, gamma, beta, eps=eps, out_dtype=jnp.bfloat16,
                       approx=True)
    out_fallback = linear_residual(y_bf16, w_t_bf16, bias, x2).reshape(B, S, D)
    out_fallback = jax.block_until_ready(out_fallback)

    # Generic path with an arbitrary JAX sublayer (here: tanh).
    out_generic = residual_skip_connection_with_layer_norm(
        x, gamma, beta, sublayer=jnp.tanh, eps=eps)
    out_generic = jax.block_until_ready(out_generic)

    # Pure-JAX reference with the module's LayerNorm semantics.
    def ln_ref(z):
        mean = z.mean(-1, keepdims=True)
        var = jnp.sum((z - mean) ** 2, -1, keepdims=True) / (D - 1)
        return gamma * (z - mean) / (jnp.sqrt(var) + eps) + beta

    ln = ln_ref(x)
    ref_generic = x + jnp.tanh(ln)
    sub_ref = jnp.dot(ln.astype(jnp.bfloat16).reshape(B * S, D), w_t_bf16,
                      preferred_element_type=jnp.float32).reshape(B, S, D)
    ref_fused = x + (sub_ref + bias)

    assert out_fused.shape == (B, S, D) and out_generic.shape == (B, S, D)
    assert bool(jnp.all(jnp.isfinite(out_fused)))
    assert bool(jnp.all(jnp.isfinite(out_fallback)))
    assert bool(jnp.all(jnp.isfinite(out_generic)))
    assert bool(jnp.allclose(out_generic, ref_generic, rtol=1e-4, atol=1e-4)), \
        float(jnp.max(jnp.abs(out_generic - ref_generic)))
    assert bool(jnp.allclose(out_fused, ref_fused, rtol=2e-2, atol=2e-2)), \
        float(jnp.max(jnp.abs(out_fused - ref_fused)))
    assert bool(jnp.allclose(out_fallback, ref_fused, rtol=2e-2, atol=2e-2)), \
        float(jnp.max(jnp.abs(out_fallback - ref_fused)))
    print("KERNEL_OK")
</pallas_src>

<mosaic_0001>
module attributes {stable_mosaic.version = 11 : i64} {
  func.func @_fused_ln_linear_kernel(%arg0: i32, %arg1: i32, %arg2: memref<16x32xf32, #tpu.memory_space<vmem>>, %arg3: memref<1x32xf32, #tpu.memory_space<vmem>>, %arg4: memref<1x32xf32, #tpu.memory_space<vmem>>, %arg5: memref<32x32xbf16, #tpu.memory_space<vmem>>, %arg6: memref<1x32xf32, #tpu.memory_space<vmem>>, %arg7: memref<16x32xf32, #tpu.memory_space<vmem>>) attributes {dimension_semantics = [#tpu.dimension_semantics<parallel>, #tpu.dimension_semantics<parallel>], iteration_bounds = array<i64: 1, 1>, scalar_prefetch = 0 : i64, scratch_operands = 0 : i64, tpu.core_type = #tpu.core_type<tc>, window_params = [{transform_indices = @transform_0, window_bounds = array<i64: 16, 32>}, {pipeline_mode = #tpu.pipeline_mode<synchronous>, transform_indices = @transform_1, window_bounds = array<i64: 1, 32>}, {pipeline_mode = #tpu.pipeline_mode<synchronous>, transform_indices = @transform_2, window_bounds = array<i64: 1, 32>}, {transform_indices = @transform_3, window_bounds = array<i64: 32, 32>}, {transform_indices = @transform_4, window_bounds = array<i64: 1, 32>}, {transform_indices = @transform_5, window_bounds = array<i64: 16, 32>}]} {
    %c0 = arith.constant 0 : index
    %c0_0 = arith.constant 0 : index
    %0 = vector.load %arg2[%c0, %c0_0] : memref<16x32xf32, #tpu.memory_space<vmem>>, vector<16x32xf32>
    %cst = arith.constant dense<0.000000e+00> : vector<16xf32>
    %1 = vector.multi_reduction <add>, %0, %cst [1] : vector<16x32xf32> to vector<16xf32>
    %2 = vector.shape_cast %1 : vector<16xf32> to vector<16x1xf32>
    %cst_1 = arith.constant 3.200000e+01 : f32
    %3 = vector.broadcast %cst_1 : f32 to vector<16x1xf32>
    %4 = arith.divf %2, %3 : vector<16x1xf32>
    %5 = vector.broadcast %4 : vector<16x1xf32> to vector<16x32xf32>
    %6 = arith.subf %0, %5 : vector<16x32xf32>
    %7 = arith.mulf %6, %6 : vector<16x32xf32>
    %cst_2 = arith.constant dense<0.000000e+00> : vector<16xf32>
    %8 = vector.multi_reduction <add>, %7, %cst_2 [1] : vector<16x32xf32> to vector<16xf32>
    %9 = vector.shape_cast %8 : vector<16xf32> to vector<16x1xf32>
    %cst_3 = arith.constant 0.0322580636 : f32
    %10 = vector.broadcast %cst_3 : f32 to vector<16x1xf32>
    %11 = arith.mulf %9, %10 : vector<16x1xf32>
    %12 = math.sqrt %11 : vector<16x1xf32>
    %cst_4 = arith.constant 9.99999997E-7 : f32
    %13 = vector.broadcast %cst_4 : f32 to vector<16x1xf32>
    %14 = arith.addf %12, %13 : vector<16x1xf32>
    %15 = tpu.reciprocal %14 {approx = true} : vector<16x1xf32> -> vector<16x1xf32>
    %c0_5 = arith.constant 0 : index
    %c0_6 = arith.constant 0 : index
    %16 = vector.load %arg3[%c0_5, %c0_6] : memref<1x32xf32, #tpu.memory_space<vmem>>, vector<1x32xf32>
    %17 = vector.broadcast %15 : vector<16x1xf32> to vector<16x32xf32>
    %18 = arith.mulf %6, %17 : vector<16x32xf32>
    %19 = vector.broadcast %16 : vector<1x32xf32> to vector<16x32xf32>
    %20 = arith.mulf %19, %18 : vector<16x32xf32>
    %c0_7 = arith.constant 0 : index
    %c0_8 = arith.constant 0 : index
    %21 = vector.load %arg4[%c0_7, %c0_8] : memref<1x32xf32, #tpu.memory_space<vmem>>, vector<1x32xf32>
    %22 = vector.broadcast %21 : vector<1x32xf32> to vector<16x32xf32>
    %23 = arith.addf %20, %22 : vector<16x32xf32>
    %24 = arith.truncf %23 : vector<16x32xf32> to vector<16x32xbf16>
    %c0_9 = arith.constant 0 : index
    %c0_10 = arith.constant 0 : index
    %25 = vector.load %arg5[%c0_9, %c0_10] : memref<32x32xbf16, #tpu.memory_space<vmem>>, vector<32x32xbf16>
    %cst_11 = arith.constant dense<0.000000e+00> : vector<16x32xf32>
    %26 = tpu.matmul %24, %25, %cst_11 {dimension_numbers = #tpu.dot_dimension_numbers<[1], [0], [0], [1], [0, 0, 1, 1], [], []>} : vector<16x32xbf16>, vector<32x32xbf16>, vector<16x32xf32> -> vector<16x32xf32>
    %27 = arith.addf %0, %26 : vector<16x32xf32>
    %c0_12 = arith.constant 0 : index
    %c0_13 = arith.constant 0 : index
    %28 = vector.load %arg6[%c0_12, %c0_13] : memref<1x32xf32, #tpu.memory_space<vmem>>, vector<1x32xf32>
    %29 = vector.broadcast %28 : vector<1x32xf32> to vector<16x32xf32>
    %30 = arith.addf %27, %29 : vector<16x32xf32>
    %c0_14 = arith.constant 0 : index
    %c0_15 = arith.constant 0 : index
    %31 = vector.load %arg7[%c0_14, %c0_15] : memref<16x32xf32, #tpu.memory_space<vmem>>, vector<16x32xf32>
    tpu.vector_store %arg7[%c0_14, %c0_15], %30 {strides = array<i32>} : memref<16x32xf32, #tpu.memory_space<vmem>>, vector<16x32xf32>,
    return
  }
  func.func @transform_0(%arg0: i32, %arg1: i32) -> (i32, i32) {
    %c0_i32 = arith.constant 0 : i32
    %c0_i32_0 = arith.constant 0 : i32
    return %arg0, %c0_i32 : i32, i32
  }
  func.func @transform_1(%arg0: i32, %arg1: i32) -> (i32, i32) {
    %c0_i32 = arith.constant 0 : i32
    %c0_i32_0 = arith.constant 0 : i32
    %c0_i32_1 = arith.constant 0 : i32
    return %c0_i32, %c0_i32_0 : i32, i32
  }
  func.func @transform_2(%arg0: i32, %arg1: i32) -> (i32, i32) {
    %c0_i32 = arith.constant 0 : i32
    %c0_i32_0 = arith.constant 0 : i32
    %c0_i32_1 = arith.constant 0 : i32
    return %c0_i32, %c0_i32_0 : i32, i32
  }
  func.func @transform_3(%arg0: i32, %arg1: i32) -> (i32, i32) {
    %c0_i32 = arith.constant 0 : i32
    %c0_i32_0 = arith.constant 0 : i32
    return %c0_i32, %arg1 : i32, i32
  }
  func.func @transform_4(%arg0: i32, %arg1: i32) -> (i32, i32) {
    %c0_i32 = arith.constant 0 : i32
    %c0_i32_0 = arith.constant 0 : i32
    return %c0_i32, %arg1 : i32, i32
  }
  func.func @transform_5(%arg0: i32, %arg1: i32) -> (i32, i32) {
    %c0_i32 = arith.constant 0 : i32
    return %arg0, %arg1 : i32, i32
  }
}

</mosaic_0001>

<bundles_post_ra>
// kernel: tpu_custom_call.1
= control target key start
LH: loop header
LB: loop body
LE: loop exit
PB: predicated region body
PF: predicated region fallthrough
CT: control target
= control target key end

     0   :  { %10 = vsyncpa [#allocation3], 0  ;;  %s419_s0 = inlined_call_operand.hbm [shape: f32[16,32], index: 0, kind: input, shape index: {}]   ;;  %s420_s1 = inlined_call_operand.vmem [shape: f32[1,32], index: 1, kind: input, shape index: {}]   ;;  %s421_s2 = inlined_call_operand.vmem [shape: f32[1,32], index: 2, kind: input, shape index: {}]   ;;  %s422_s3 = inlined_call_operand.hbm [shape: bf16[32,32], index: 3, kind: input, shape index: {}]   ;;  %s423_s4 = inlined_call_operand.vmem [shape: f32[1,32], index: 4, kind: input, shape index: {}]   ;;  %s424_s5 = inlined_call_operand.hbm [shape: f32[16,32], index: 5, kind: output, shape index: {}]  }
   0x1   :  { %11 = vsyncpa [#allocation6], 0 }
   0x2   :  { %12 = vsyncpa [#allocation4], 0  ;;  %s312_s18 = smov [#allocation2]   ;;  %s240_s22 = scalar_lea.hbm %s419_s0, 256 }
   0x3   :  { %s18_s19 = sshll.u32 %s312_s18, 4  ;;  %p241_p0 = scmp.ne.s32.totalorder %s419_s0, %s240_s22  ;;  %s19_s19 = int_to_ptr.vmem [resolvable:$true] %s18_s19 }
   0x4   :  { %p244_p1 = scmp.lt.u32.totalorder %s240_s22, %s419_s0 }
   0x6   :  { %p246_p2 = pnand %p244_p1, %p241_p0 }
   0x8   :  { %249 = shalt.err (!%p246_p2)
}
   0x9   :  { %s250_s27 = scalar_lea.vmem %s19_s19, 256  ;;  %p255_p4 = scmp.lt.s32.totalorder %s19_s19, %s19_s19 }
   0xa   :  { %p251_p3 = scmp.ne.s32.totalorder %s19_s19, %s250_s27  ;;  %p256_p5 = scmp.lt.s32.totalorder %s250_s27, %s250_s27 }
   0xc   :  { %p257_p6 = por %p256_p5, %p255_p4 }
   0xe   :  { %p258_p7 = pnand %p257_p6, %p251_p3 }
  0x10   :  { %261 = shalt.err (!%p258_p7)
}
  0x11   :  { %s313_s28 = smov 128   ;;  %s314_s29 = smov 8  }
  0x12   :  { %24 = dma.hbm_to_vmem [thread:$0]  %s419_s0, 256, %s19_s19, [#allocation3], %s313_s28, %s313_s28, %s314_s29  }
  0x13   :  { %s315_s7 = smov [#allocation5]   ;;  %s262_s11 = scalar_lea.hbm %s422_s3, 256 }
  0x14   :  { %s34_s8 = sshll.u32 %s315_s7, 4  ;;  %p263_p8 = scmp.ne.s32.totalorder %s422_s3, %s262_s11  ;;  %s35_s8 = int_to_ptr.vmem [resolvable:$true] %s34_s8 }
  0x15   :  { %p266_p9 = scmp.lt.u32.totalorder %s262_s11, %s422_s3 }
  0x17   :  { %p268_p10 = pnand %p266_p9, %p263_p8 }
  0x19   :  { %271 = shalt.err (!%p268_p10)
}
  0x1a   :  { %s272_s16 = scalar_lea.vmem %s35_s8, 256  ;;  %p277_p12 = scmp.lt.s32.totalorder %s35_s8, %s35_s8 }
  0x1b   :  { %p273_p11 = scmp.ne.s32.totalorder %s35_s8, %s272_s16  ;;  %p278_p13 = scmp.lt.s32.totalorder %s272_s16, %s272_s16 }
  0x1d   :  { %p279_p0 = por %p278_p13, %p277_p12 }
  0x1f   :  { %p280_p1 = pnand %p279_p0, %p273_p11 }
  0x21   :  { %283 = shalt.err (!%p280_p1)
}
  0x22   :  { %s316_s0 = smov 64   ;;  %s317_s17 = smov 4  }
  0x23   :  { %40 = dma.hbm_to_vmem [thread:$0]  %s422_s3, 256, %s35_s8, [#allocation6], %s316_s0, %s316_s0, %s317_s17  }
  0x24   :  { %306 = dma.done.wait [#allocation3], 256  }
  0x25   :  { %307 = vsyncadd [#allocation3], 4294967040 }
  0x26   :  { %308 = dma.done.wait [#allocation6], 256  }
  0x27   :  { %309 = vsyncadd [#allocation6], 4294967040  ;;  %vm52_vm0 = vcmask 261120   ;;  %v378_v0 = vld [vmem:[#allocation2] sm:$0xff]  ;;  %v380_v1 = vld [vmem:[#allocation2 + $0x8] sm:$0xff]  ;;  %v318_v15 = vmov 0.0  }
  0x28   :  { %v53_v2 = vsel %vm52_vm0, %v378_v0, 0.0  ;;  %v56_v3 = vsel %vm52_vm0, %v380_v1, 0.0  ;;  %v230_v14 = vld [vmem:[#allocation5] sm:$0xff]   ;;  %213 = vmatprep.subr.bf16.mxu0 %v318_v15  ;;  %vm319_vm1 = vmmov 0   ;;  %v231_v16 = vld [vmem:[#allocation5 + $0x8] sm:$0xff]  }
  0x29   :  { %54 = vadd.xlane.f32.xlu0 %v53_v2  ;;  %217 = vmatprep.mubr.msk.bf16.mxu0 %vm319_vm1, %v318_v15  ;;  %v204_v35 = vld [vmem:[%s420_s1] ss:$0 sm:$0xff]  ;;  %s320_s1 = smov [#allocation7]  }
  0x2a   :  { %214 = vmatpush3.bf16.msra.mxu0 %v230_v14  ;;  %v205_v39 = vld [vmem:[%s421_s2] ss:$0 sm:$0xff]  ;;  %s191_s25 = sshll.u32 %s320_s1, 4  ;;  %s192_s25 = int_to_ptr.vmem [resolvable:$true] %s191_s25 }
  0x2b   :  { %215 = vmatprep.subr.bf16.mxu0 %v318_v15  ;;  %v209_v45 = vld [vmem:[%s423_s4] ss:$0 sm:$0xff]  ;;  %s284_s2 = scalar_lea.vmem %s192_s25, 256  ;;  %p289_p3 = scmp.lt.s32.totalorder %s192_s25, %s192_s25 }
  0x2c   :  { %p285_p2 = scmp.ne.s32.totalorder %s192_s25, %s284_s2  ;;  %p290_p4 = scmp.lt.s32.totalorder %s284_s2, %s284_s2 }
  0x2d   :  { %57 = vadd.xlane.f32.xlu0 %v56_v3 }
  0x2e   :  { %216 = vmatpush3.bf16.msra.mxu0 %v231_v16  ;;  %p291_p5 = por %p290_p4, %p289_p3 }
  0x30   :  { %p292_p6 = pnand %p291_p5, %p285_p2 }
  0xb6   :  { %v55_v4 = vpop.xlane.xlu0 %54 }
  0xb7   :  { %v60_v5 = vmul.f32 0.03125, %v55_v4 }
  0xb9   :  { %v62_v6 = vsub.f32 %v378_v0, %v60_v5 }
  0xba   :  { %v58_v7 = vpop.xlane.xlu0 %57 }
  0xbb   :  { %v61_v8 = vmul.f32 0.03125, %v58_v7  ;;  %v64_v9 = vmul.f32 %v62_v6, %v62_v6 }
  0xbd   :  { %v63_v10 = vsub.f32 %v380_v1, %v61_v8  ;;  %v66_v11 = vsel %vm52_vm0, %v64_v9, 0.0 }
  0xbe   :  { %67 = vadd.xlane.f32.xlu1 %v66_v11 }
  0xbf   :  { %v65_v12 = vmul.f32 %v63_v10, %v63_v10 }
  0xc1   :  { %v69_v13 = vsel %vm52_vm0, %v65_v12, 0.0 }
  0xc2   :  { %70 = vadd.xlane.f32.xlu1 %v69_v13 }
 0x14b   :  { %v68_v17 = vpop.xlane.xlu1 %67 }
 0x14c   :  { %v72_v18 = vmul.f32 0.032258064, %v68_v17 }
 0x14e   :  { %232 = vrsqrt.f32 %v72_v18  ;;  %vm76_vm2 = vcmp.eq.f32.partialorder %v72_v18, inf  ;;  %v79_v23 = vand.u32 2147483648, %v72_v18  ;;  %vm78_vm3 = vcmp.eq.f32.partialorder %v72_v18, 0.0 }
 0x14f   :  { %v71_v19 = vpop.xlane.xlu1 %70 }
 0x150   :  { %v73_v20 = vmul.f32 0.032258064, %v71_v19 }
 0x152   :  { %234 = vrsqrt.f32 %v73_v20  ;;  %vm83_vm4 = vcmp.eq.f32.partialorder %v73_v20, inf  ;;  %v86_v29 = vand.u32 2147483648, %v73_v20  ;;  %vm85_vm5 = vcmp.eq.f32.partialorder %v73_v20, 0.0 }
 0x158   :  { %v233_v21 = vpop.eup %232 }
 0x159   :  { %v75_v22 = vmul.f32 %v233_v21, %v72_v18 }
 0x15b   :  { %v77_v24 = vsel %vm76_vm2, %v72_v18, %v75_v22 }
 0x15c   :  { %v235_v25 = vpop.eup %234  ;;  %v80_v26 = vsel %vm78_vm3, %v79_v23, %v77_v24 }
 0x15d   :  { %v88_v27 = vadd.f32 1e-06, %v80_v26  ;;  %v82_v28 = vmul.f32 %v235_v25, %v73_v20 }
 0x15f   :  { %236 = vrcp.f32 %v88_v27  ;;  %v84_v30 = vsel %vm83_vm4, %v73_v20, %v82_v28 }
 0x160   :  { %v87_v31 = vsel %vm85_vm5, %v86_v29, %v84_v30 }
 0x161   :  { %v89_v32 = vadd.f32 1e-06, %v87_v31 }
 0x163   :  { %238 = vrcp.f32 %v89_v32 }
 0x169   :  { %v237_v33 = vpop.eup %236 }
 0x16a   :  { %v93_v34 = vmul.f32 %v237_v33, %v62_v6 }
 0x16c   :  { %v101_v38 = vmul.f32 %v204_v35, %v93_v34 }
 0x16d   :  { %v239_v36 = vpop.eup %238 }
 0x16e   :  { %v94_v37 = vmul.f32 %v239_v36, %v63_v10  ;;  %v110_v41 = vadd.f32 %v205_v39, %v101_v38 }
 0x170   :  { %v102_v40 = vmul.f32 %v204_v35, %v94_v37 }
 0x172   :  { %v111_v42 = vadd.f32 %v205_v39, %v102_v40 }
 0x174   :  { %v112_v43 = vpack.c.bf16 %v111_v42, %v110_v41 }
 0x176   :  { %218 = vmatmul.mubr.msk.bf16.vlgmr.msra.gmra.mrb[0].mxu0 %vm52_vm0, %v112_v43 }
 0x249   :  { %v166_v44 = vpop.f32.mrb[0].mxu0 }
 0x24a   :  { %v173_v46 = vadd.f32 %v166_v44, %v378_v0  ;;  %v219_v47 = vpop.f32.mrb[1].mxu0 }
 0x24b   :  { %v169_v48 = vpop.f32.mrb[2].mxu0 }
 0x24c   :  { %v182_v49 = vadd.f32 %v209_v45, %v173_v46  ;;  %v174_v50 = vadd.f32 %v169_v48, %v380_v1  ;;  %v220_v51 = vpop.f32.mrb[3].mxu0 }
 0x24e   :  { %184 = vst.msk [vmem:[#allocation7] sm:$0xff] %vm52_vm0, %v182_v49  ;;  %v183_v52 = vadd.f32 %v209_v45, %v174_v50 }
 0x250   :  { %185 = vst.msk [vmem:[#allocation7 + $0x8] sm:$0xff] %vm52_vm0, %v183_v52 }
 0x251   :  { %295 = shalt.err (!%p292_p6)
}
 0x252   :  { %s296_s27 = scalar_lea.hbm %s424_s5, 256 }
 0x253   :  { %p297_p7 = scmp.ne.s32.totalorder %s424_s5, %s296_s27  ;;  %p300_p8 = scmp.lt.u32.totalorder %s296_s27, %s424_s5 }
 0x255   :  { %p302_p9 = pnand %p300_p8, %p297_p7 }
 0x257   :  { %305 = shalt.err (!%p302_p9)
}
 0x258   :  { %197 = dma.vmem_to_hbm [thread:$0]  %s192_s25, 256, %s424_s5, [#allocation4], %s313_s28, %s313_s28, %s314_s29  }
 0x259   :  { %310 = dma.done.wait [#allocation4], 256  }
 0x25a   :  { %311 = vsyncadd [#allocation4], 4294967040 }
 0x25b   :  { %201 = vsyncpa [#allocation3], 1 }
 0x25c   :  { %202 = vsyncpa [#allocation6], 1 }
 0x25d   :  { %203 = vsyncpa [#allocation4], 1 }

</bundles_post_ra>
